<compile_context>
chip_gen: v6e
topology: v6e:2x2x1
jax: 0.10.0
libtpu: 0.0.40
codegen_flags: <defaults>
</compile_context>

<pallas_src>
import functools

import jax
import jax.numpy as jnp
from jax import lax
from jax.experimental import pallas as pl
from jax.experimental.pallas import tpu as pltpu


def _round_up(x, m):
    return ((x + m - 1) // m) * m


def fc_kernel(x_ref, w_ref, b_ref, o_ref, acc_ref):
    k = pl.program_id(2)

    @pl.when(k == 0)
    def _init():
        # Fold the bias into the accumulator init (saves a VPU add + broadcast
        # in the epilogue).
        acc_ref[...] = jnp.broadcast_to(
            b_ref[...].astype(jnp.float32), acc_ref.shape
        )

    # x tile: (tm, tk), w tile: (tn, tk)  ->  contract K (i.e. x @ w.T), MXU
    # matmul with f32 accumulation.
    acc_ref[...] += lax.dot_general(
        x_ref[...],
        w_ref[...],
        dimension_numbers=(((1,), (1,)), ((), ())),
        preferred_element_type=jnp.float32,
    )

    @pl.when(k == pl.num_programs(2) - 1)
    def _store():
        o_ref[...] = acc_ref[...].astype(o_ref.dtype)


@functools.partial(jax.jit, static_argnames=("tm", "tn", "tk", "compute_dtype"))
def fc_forward(x, w, b, *, tm=512, tn=512, tk=2048, compute_dtype=jnp.bfloat16):
    """Equivalent to torch.nn.Linear(n_in, n_out)(x).

    x : (..., n_in)
    w : (n_out, n_in)   (PyTorch weight layout, kept as-is)
    b : (n_out,)
    compute_dtype : MXU operand dtype (bf16 fast path / f32 exact path);
                    accumulation is always f32.
    """
    orig_shape = x.shape
    n_in = orig_shape[-1]
    n_out = w.shape[0]
    out_dtype = x.dtype

    # Flatten leading dims into a single row axis (nn.Linear semantics).
    x2d = x.reshape(-1, n_in)
    M = x2d.shape[0]

    in_bytes = jnp.dtype(compute_dtype).itemsize
    m_align = 8 * (4 // in_bytes)        # 8 for f32 tiles, 16 for bf16 tiles

    # Tile sizes: lane-dense (x128) on N and K, sublane-aligned on M.
    tm = min(tm, _round_up(M, m_align))
    tn = min(tn, _round_up(n_out, 128))
    tk = min(tk, _round_up(n_in, 128))

    M_p = _round_up(M, tm)
    N_p = _round_up(n_out, tn)
    K_p = _round_up(n_in, tk)

    # v7x megacore: if both parallel axes collapsed to one block but M is big
    # enough to split, halve tm so both TensorCores get work.
    if (M_p // tm) * (N_p // tn) == 1 and M_p >= 2 * m_align:
        tm = _round_up((M + 1) // 2, m_align)
        M_p = _round_up(M, tm)

    # Pad / cast only when actually needed (pad + cast fuse under jit; cast is
    # a no-op on the f32 path).
    if (M_p, K_p) != (M, n_in):
        x2d = jnp.pad(x2d, ((0, M_p - M), (0, K_p - n_in)))
    x_c = x2d.astype(compute_dtype)

    w_p = w
    if (N_p, K_p) != (n_out, n_in):
        w_p = jnp.pad(w, ((0, N_p - n_out), (0, K_p - n_in)))
    w_c = w_p.astype(compute_dtype)

    b2d = b.reshape(1, n_out).astype(jnp.float32)
    if N_p != n_out:
        b2d = jnp.pad(b2d, ((0, 0), (0, N_p - n_out)))

    grid = (N_p // tn, M_p // tm, K_p // tk)   # N slowest, M next, K innermost

    # Double-buffered inputs/outputs + f32 accumulator + bias, with headroom.
    out_bytes = jnp.dtype(out_dtype).itemsize
    working_set = (
        2 * (tm * tk + tn * tk) * in_bytes   # x / w double-buffered tiles
        + 2 * tm * tn * out_bytes            # output double-buffered tile
        + tm * tn * 4                        # f32 accumulator scratch
        + 2 * tn * 4                         # bias tile
    )
    vmem_limit = max(int(working_set * 1.25) + (2 << 20), 16 << 20)
    vmem_limit = min(vmem_limit, 96 << 20)

    # Advisory cost with true re-streaming: x re-read once per N tile, weight
    # once per M tile unless it is resident (single K block).
    w_restream = (M_p // tm) if (K_p // tk) > 1 else 1
    cost = pl.CostEstimate(
        flops=2 * M_p * K_p * N_p,
        transcendentals=0,
        bytes_accessed=(
            in_bytes * (M_p * K_p * (N_p // tn) + K_p * N_p * w_restream)
            + out_bytes * M_p * N_p
            + 4 * N_p
        ),
    )

    out_p = pl.pallas_call(
        fc_kernel,
        out_shape=jax.ShapeDtypeStruct((M_p, N_p), out_dtype),
        grid_spec=pltpu.PrefetchScalarGridSpec(
            num_scalar_prefetch=0,
            grid=grid,
            in_specs=[
                pl.BlockSpec((tm, tk), lambda j, i, k: (i, k)),   # x tile
                pl.BlockSpec((tn, tk), lambda j, i, k: (j, k)),   # weight tile (PyTorch layout, ignores M)
                pl.BlockSpec((1, tn), lambda j, i, k: (0, j)),    # bias tile
            ],
            out_specs=pl.BlockSpec((tm, tn), lambda j, i, k: (i, j)),
            scratch_shapes=[pltpu.VMEM((tm, tn), jnp.float32)],
        ),
        compiler_params=pltpu.CompilerParams(
            dimension_semantics=("parallel", "parallel", "arbitrary"),
            vmem_limit_bytes=vmem_limit,
        ),
        cost_estimate=cost,
    )(x_c, w_c, b2d)

    out = out_p if (M_p, N_p) == (M, n_out) else out_p[:M, :n_out]
    return out.reshape(*orig_shape[:-1], n_out)


if __name__ == "__main__":
    # FC(n_in=32, n_out=16) on a small batch of 8 rows.
    M, n_in, n_out = 8, 32, 16
    key = jax.random.PRNGKey(0)
    kx, kw, kb = jax.random.split(key, 3)

    x = jax.random.normal(kx, (M, n_in), dtype=jnp.float32)

    # nn.Linear default init: U(-1/sqrt(n_in), 1/sqrt(n_in))
    bound = 1.0 / jnp.sqrt(jnp.float32(n_in))
    w = jax.random.uniform(kw, (n_out, n_in), minval=-bound, maxval=bound,
                           dtype=jnp.float32)  # PyTorch layout (n_out, n_in)
    b = jax.random.uniform(kb, (n_out,), minval=-bound, maxval=bound,
                           dtype=jnp.float32)

    y_ref = x @ w.T + b

    # Default fast path: bf16 operands / f32 accumulation.
    y_bf16 = fc_forward(x, w, b)
    jax.block_until_ready(y_bf16)
    assert y_bf16.shape == (M, n_out)
    assert jnp.allclose(y_bf16, y_ref, atol=2e-2, rtol=2e-2)

    # Exact path: f32 operands, matches torch.nn.Linear numerics.
    y_f32 = fc_forward(x, w, b, compute_dtype=jnp.float32)
    jax.block_until_ready(y_f32)
    assert y_f32.shape == (M, n_out)
    assert jnp.allclose(y_f32, y_ref, atol=1e-5, rtol=1e-5)

    print("KERNEL_OK")
</pallas_src>

<mosaic_0001>
module attributes {stable_mosaic.version = 11 : i64} {
  func.func @fc_kernel(%arg0: i32, %arg1: i32, %arg2: i32, %arg3: memref<16x128xbf16, #tpu.memory_space<vmem>>, %arg4: memref<128x128xbf16, #tpu.memory_space<vmem>>, %arg5: memref<1x128xf32, #tpu.memory_space<vmem>>, %arg6: memref<16x128xf32, #tpu.memory_space<vmem>>, %arg7: memref<16x128xf32, #tpu.memory_space<vmem>>) attributes {dimension_semantics = [#tpu.dimension_semantics<parallel>, #tpu.dimension_semantics<parallel>, #tpu.dimension_semantics<arbitrary>], iteration_bounds = array<i64: 1, 1, 1>, scalar_prefetch = 0 : i64, scratch_operands = 1 : i64, tpu.core_type = #tpu.core_type<tc>, window_params = [{transform_indices = @transform_0, window_bounds = array<i64: 16, 128>}, {transform_indices = @transform_1, window_bounds = array<i64: 128, 128>}, {transform_indices = @transform_2, window_bounds = array<i64: 1, 128>}, {transform_indices = @transform_3, window_bounds = array<i64: 16, 128>}]} {
    %c0_i32 = arith.constant 0 : i32
    %0 = arith.cmpi eq, %arg2, %c0_i32 : i32
    %1 = arith.extui %0 : i1 to i32
    %c0_i32_0 = arith.constant 0 : i32
    %2 = arith.cmpi ne, %1, %c0_i32_0 : i32
    scf.if %2 {
      %c0_10 = arith.constant 0 : index
      %c0_11 = arith.constant 0 : index
      %12 = vector.load %arg5[%c0_10, %c0_11] : memref<1x128xf32, #tpu.memory_space<vmem>>, vector<1x128xf32>
      %13 = vector.shape_cast %12 : vector<1x128xf32> to vector<1x128xf32>
      %14 = vector.broadcast %13 : vector<1x128xf32> to vector<16x128xf32>
      %c0_12 = arith.constant 0 : index
      %c0_13 = arith.constant 0 : index
      %15 = vector.load %arg7[%c0_12, %c0_13] : memref<16x128xf32, #tpu.memory_space<vmem>>, vector<16x128xf32>
      tpu.vector_store %arg7[%c0_12, %c0_13], %14 {strides = array<i32>} : memref<16x128xf32, #tpu.memory_space<vmem>>, vector<16x128xf32>,
    } else {
    }
    %c0 = arith.constant 0 : index
    %c0_1 = arith.constant 0 : index
    %3 = vector.load %arg7[%c0, %c0_1] : memref<16x128xf32, #tpu.memory_space<vmem>>, vector<16x128xf32>
    %c0_2 = arith.constant 0 : index
    %c0_3 = arith.constant 0 : index
    %4 = vector.load %arg3[%c0_2, %c0_3] : memref<16x128xbf16, #tpu.memory_space<vmem>>, vector<16x128xbf16>
    %c0_4 = arith.constant 0 : index
    %c0_5 = arith.constant 0 : index
    %5 = vector.load %arg4[%c0_4, %c0_5] : memref<128x128xbf16, #tpu.memory_space<vmem>>, vector<128x128xbf16>
    %cst = arith.constant dense<0.000000e+00> : vector<16x128xf32>
    %6 = tpu.matmul %4, %5, %cst {dimension_numbers = #tpu.dot_dimension_numbers<[1], [1], [0], [0], [0, 0, 1, 0], [], []>} : vector<16x128xbf16>, vector<128x128xbf16>, vector<16x128xf32> -> vector<16x128xf32>
    %7 = arith.addf %3, %6 : vector<16x128xf32>
    %c0_6 = arith.constant 0 : index
    %c0_7 = arith.constant 0 : index
    %8 = vector.load %arg7[%c0_6, %c0_7] : memref<16x128xf32, #tpu.memory_space<vmem>>, vector<16x128xf32>
    tpu.vector_store %arg7[%c0_6, %c0_7], %7 {strides = array<i32>} : memref<16x128xf32, #tpu.memory_space<vmem>>, vector<16x128xf32>,
    %c0_i32_8 = arith.constant 0 : i32
    %9 = arith.cmpi eq, %arg2, %c0_i32_8 : i32
    %10 = arith.extui %9 : i1 to i32
    %c0_i32_9 = arith.constant 0 : i32
    %11 = arith.cmpi ne, %10, %c0_i32_9 : i32
    scf.if %11 {
      %c0_10 = arith.constant 0 : index
      %c0_11 = arith.constant 0 : index
      %12 = vector.load %arg7[%c0_10, %c0_11] : memref<16x128xf32, #tpu.memory_space<vmem>>, vector<16x128xf32>
      %c0_12 = arith.constant 0 : index
      %c0_13 = arith.constant 0 : index
      %13 = vector.load %arg6[%c0_12, %c0_13] : memref<16x128xf32, #tpu.memory_space<vmem>>, vector<16x128xf32>
      tpu.vector_store %arg6[%c0_12, %c0_13], %12 {strides = array<i32>} : memref<16x128xf32, #tpu.memory_space<vmem>>, vector<16x128xf32>,
    } else {
    }
    return
  }
  func.func @transform_0(%arg0: i32, %arg1: i32, %arg2: i32) -> (i32, i32) {
    %c0_i32 = arith.constant 0 : i32
    return %arg1, %arg2 : i32, i32
  }
  func.func @transform_1(%arg0: i32, %arg1: i32, %arg2: i32) -> (i32, i32) {
    %c0_i32 = arith.constant 0 : i32
    return %arg0, %arg2 : i32, i32
  }
  func.func @transform_2(%arg0: i32, %arg1: i32, %arg2: i32) -> (i32, i32) {
    %c0_i32 = arith.constant 0 : i32
    %c0_i32_0 = arith.constant 0 : i32
    return %c0_i32, %arg0 : i32, i32
  }
  func.func @transform_3(%arg0: i32, %arg1: i32, %arg2: i32) -> (i32, i32) {
    %c0_i32 = arith.constant 0 : i32
    return %arg1, %arg0 : i32, i32
  }
}

</mosaic_0001>

<bundles_post_ra>
// kernel: fc_forward.1
= control target key start
LH: loop header
LB: loop body
LE: loop exit
PB: predicated region body
PF: predicated region fallthrough
CT: control target
= control target key end

     0   :  { %v208_v0 = vmov 0.0   ;;  %vm209_vm0 = vmmov 0   ;;  %s266_s1 = inlined_call_operand.vmem [shape: bf16[128,128], index: 1, kind: input, shape index: {}]   ;;  %s267_s0 = inlined_call_operand.vmem [shape: bf16[16,128], index: 0, kind: input, shape index: {}]   ;;  %s268_s2 = inlined_call_operand.vmem [shape: f32[1,128], index: 2, kind: input, shape index: {}]   ;;  %s269_s3 = inlined_call_operand.vmem [shape: f32[16,128], index: 3, kind: output, shape index: {}]  }
   0x1   :  { %177 = vmatprep.subr.bf16.mxu0 %v208_v0  ;;  %v199_v1 = vld [vmem:[%s266_s1 + $0x38] sm:$0xff]   ;;  %193 = vmatprep.mubr.msk.bf16.mxu0 %vm209_vm0, %v208_v0  ;;  %v200_v2 = vld [vmem:[%s266_s1 + $0x30] sm:$0xff]   ;;  %v201_v3 = vld [vmem:[%s266_s1 + $0x28] sm:$0xff]  }
   0x2   :  { %178 = vmatpush3.bf16.xpose.msra.mxu0 %v199_v1  ;;  %v202_v4 = vld [vmem:[%s266_s1 + $0x20] sm:$0xff]   ;;  %v203_v5 = vld [vmem:[%s266_s1 + $0x18] sm:$0xff]   ;;  %v204_v6 = vld [vmem:[%s266_s1 + $0x10] sm:$0xff]  }
   0x3   :  { %179 = vmatprep.subr.bf16.mxu0 %v208_v0  ;;  %v205_v7 = vld [vmem:[%s266_s1 + $0x8] sm:$0xff]   ;;  %v206_v8 = vld [vmem:[%s266_s1] sm:$0xff]  }
   0x4   :  { %v207_v9 = vld [vmem:[%s267_s0] sm:$0xff]  }
   0x5   :  { %v158_v10 = vld [vmem:[%s268_s2] ss:$0 sm:$0xff] }
   0xa   :  { %180 = vmatpush3.bf16.xpose.msra.mxu0 %v200_v2 }
   0xb   :  { %181 = vmatprep.subr.bf16.mxu0 %v208_v0 }
  0x12   :  { %182 = vmatpush3.bf16.xpose.msra.mxu0 %v201_v3 }
  0x13   :  { %183 = vmatprep.subr.bf16.mxu0 %v208_v0 }
  0x1a   :  { %184 = vmatpush3.bf16.xpose.msra.mxu0 %v202_v4 }
  0x1b   :  { %185 = vmatprep.subr.bf16.mxu0 %v208_v0 }
  0x22   :  { %186 = vmatpush3.bf16.xpose.msra.mxu0 %v203_v5 }
  0x23   :  { %187 = vmatprep.subr.bf16.mxu0 %v208_v0 }
  0x2a   :  { %188 = vmatpush3.bf16.xpose.msra.mxu0 %v204_v6 }
  0x2b   :  { %189 = vmatprep.subr.bf16.mxu0 %v208_v0 }
  0x32   :  { %190 = vmatpush3.bf16.xpose.msra.mxu0 %v205_v7 }
  0x33   :  { %191 = vmatprep.subr.bf16.mxu0 %v208_v0 }
  0x3a   :  { %192 = vmatpush3.bf16.xpose.msra.mxu0 %v206_v8 }
  0x41   :  { %194 = vmatmul.mubr.bf16.vlgmr.msra.gmra.mxu0 %v207_v9 }
 0x101   :  { %v136_v11 = vpop.f32.mrf.mxu0 }
 0x102   :  { %v143_v12 = vadd.f32 %v158_v10, %v136_v11 }
 0x103   :  { %v195_v13 = vpop.f32.mrf.mxu0 }
 0x104   :  { %152 = vst [vmem:[%s269_s3] sm:$0xff] %v143_v12 }
 0x105   :  { %v139_v14 = vpop.f32.mrf.mxu0 }
 0x106   :  { %v144_v15 = vadd.f32 %v158_v10, %v139_v14 }
 0x107   :  { %v196_v16 = vpop.f32.mrf.mxu0 }
 0x108   :  { %153 = vst [vmem:[%s269_s3 + $0x8] sm:$0xff] %v144_v15 }

</bundles_post_ra>
